<compile_context>
chip_gen: v7x
topology: tpu7x:2x2x1
jax: 0.10.0
libtpu: 0.0.40
codegen_flags: <defaults>
</compile_context>

<pallas_src>
import functools

import jax
import jax.numpy as jnp
from jax.experimental import pallas as pl
from jax.experimental.pallas import tpu as pltpu

N_HIDDEN = 64
LANE = 128
MAX_TILE_B = 2048      # rows per grid step; ~2.4 MiB double-buffered f32


def _round_up(n, m):
    return ((n + m - 1) // m) * m


def _walkroom_kernel(x_ref, blob_ref, out_ref, *, k, b1_off, w2_off, b2_off):
    # Static ref slices into the packed parameter blob (8-aligned offsets).
    w1 = blob_ref[0:k, :]                               # (nS+nO+1, 128)
    b1 = blob_ref[b1_off:b1_off + 1, :]                 # (1, 128)
    w2 = blob_ref[w2_off:w2_off + 2 * N_HIDDEN, :]      # (128, 128)
    b2 = blob_ref[b2_off:b2_off + 1, :]                 # (1, 128)

    # Fused embeddings: one (TILE_B, k) @ (k, 128) matmul + full-vreg sigmoid.
    a = jnp.dot(x_ref[...], w1, preferred_element_type=jnp.float32)
    a = jax.nn.sigmoid(a + b1)          # lanes [0:64)=s_emb, [64:128)=c_emb

    # s * c via XLU roll (swap the two 64-lane halves); positive axis required.
    h = a * pltpu.roll(a, shift=N_HIDDEN, axis=1)

    # Final Linear. w2 rows [64:128) are zero so the duplicated c*s half is
    # inert; pad columns have zero weight and -1e30 bias so they vanish in
    # the log-softmax below.
    logits = jnp.dot(h, w2, preferred_element_type=jnp.float32) + b2

    # Log-softmax: logits - (m + log(sum(exp(logits - m)))).
    m = jnp.max(logits, axis=-1, keepdims=True)
    lse = m + jnp.log(jnp.sum(jnp.exp(logits - m), axis=-1, keepdims=True))
    out_ref[...] = logits - lse


def pack_params(params, scaling_factor):
    """One-time repack into a single (rows, 128) blob:
       rows [0, nS+nC)        : block-diagonal embedding weights (scale folded)
       row  b1_off            : concatenated embedding bias
       rows [w2_off, +64)     : final-layer weight (lane-padded to 128 cols)
       row  b2_off            : final-layer bias (-1e30 on pad lanes)
    Section starts are multiples of 8 so in-kernel slices stay tile-aligned."""
    ws, bs = params["ws"], params["bs"]      # (nS, 64), (1, 64)
    wc, bc = params["wc"], params["bc"]      # (nO+1, 64), (1, 64)
    wf, bf = params["wf"], params["bf"]      # (64, nA), (1, nA)
    nS, nC, nA = ws.shape[0], wc.shape[0], wf.shape[1]

    assert ws.shape[1] == N_HIDDEN and wf.shape[0] == N_HIDDEN
    assert 2 * N_HIDDEN == LANE
    assert nA <= LANE, "action space wider than one lane tile not supported"

    K = nS + nC
    b1_off = _round_up(K, 8)
    w2_off = b1_off + 8
    b2_off = w2_off + 2 * N_HIDDEN
    rows = _round_up(b2_off + 1, 8)

    wc_scaled = wc * scaling_factor.reshape(-1, 1)   # (c*scale)@wc == c@(wc*scale)

    blob = jnp.zeros((rows, LANE), jnp.float32)
    blob = blob.at[:nS, :N_HIDDEN].set(ws)
    blob = blob.at[nS:K, N_HIDDEN:].set(wc_scaled)
    blob = blob.at[b1_off, :N_HIDDEN].set(bs[0])
    blob = blob.at[b1_off, N_HIDDEN:].set(bc[0])
    blob = blob.at[w2_off:w2_off + N_HIDDEN, :nA].set(wf)
    blob = blob.at[b2_off, :].set(jnp.full((LANE,), -1e30, jnp.float32))
    blob = blob.at[b2_off, :nA].set(bf[0])
    return blob, nA


@functools.partial(jax.jit, static_argnames=("nA",))
def walkroom_forward(state, desired_return, desired_horizon, blob, *, nA):
    # TODO(synk): for very large B, move this concat into the kernel (separate
    # state/command inputs) and emit a narrow (B, nA) output to cut HBM
    # round-trip + writeback traffic; irrelevant at small B.
    x = jnp.concatenate(
        [state.astype(jnp.float32),
         desired_return.astype(jnp.float32),
         desired_horizon.astype(jnp.float32)], axis=-1)   # (B, nS+nO+1)
    B, K = x.shape
    rows = blob.shape[0]

    # Static blob section offsets (mirrors pack_params).
    b1_off = _round_up(K, 8)
    w2_off = b1_off + 8
    b2_off = w2_off + 2 * N_HIDDEN

    # Pad batch to a multiple of 8 (unmasked sublane tiles), then to TILE_B.
    B_pad = _round_up(B, 8)
    tile_b = min(MAX_TILE_B, B_pad)
    B_pad = _round_up(B_pad, tile_b)
    if B_pad != B:
        x = jnp.pad(x, ((0, B_pad - B), (0, 0)))

    kernel = functools.partial(
        _walkroom_kernel, k=K, b1_off=b1_off, w2_off=w2_off, b2_off=b2_off)

    out = pl.pallas_call(
        kernel,
        out_shape=jax.ShapeDtypeStruct((B_pad, LANE), jnp.float32),
        grid=(B_pad // tile_b,),
        in_specs=[
            pl.BlockSpec((tile_b, K), lambda i: (i, 0)),       # batch-tiled x
            pl.BlockSpec((rows, LANE), lambda i: (0, 0)),      # resident weights
        ],
        out_specs=pl.BlockSpec((tile_b, LANE), lambda i: (i, 0)),
        compiler_params=pltpu.CompilerParams(
            dimension_semantics=("parallel",)),
    )(x, blob)
    return out[:B, :nA]


def init_params(key, nS, nA, nO, n_hidden=N_HIDDEN):
    """Deterministic synthetic parameters (Linear weights stored as (in, out))."""
    ks = jax.random.split(key, 6)

    def lin(kw, kb, fan_in, fan_out):
        bound = 1.0 / jnp.sqrt(jnp.float32(fan_in))
        w = jax.random.uniform(kw, (fan_in, fan_out), jnp.float32, -bound, bound)
        b = jax.random.uniform(kb, (1, fan_out), jnp.float32, -bound, bound)
        return w, b

    ws, bs = lin(ks[0], ks[1], nS, n_hidden)
    wc, bc = lin(ks[2], ks[3], nO + 1, n_hidden)
    wf, bf = lin(ks[4], ks[5], n_hidden, nA)
    return {"ws": ws, "bs": bs, "wc": wc, "bc": bc, "wf": wf, "bf": bf}


if __name__ == "__main__":
    B, nS, nA, nO = 8, 16, 4, 2

    key = jax.random.PRNGKey(0)
    k1, k2, k3, kp = jax.random.split(key, 4)

    state = jax.random.normal(k1, (B, nS), jnp.float32)
    desired_return = jax.random.normal(k2, (B, nO), jnp.float32)
    desired_horizon = jax.random.uniform(k3, (B, 1), jnp.float32, 1.0, 10.0)
    scaling_factor = jnp.array([[0.1, 0.1, 0.01]], dtype=jnp.float32)  # (1, nO+1)

    params = init_params(kp, nS, nA, nO)
    blob, nA_out = pack_params(params, scaling_factor)

    log_prob = walkroom_forward(state, desired_return, desired_horizon,
                                blob, nA=nA_out)
    jax.block_until_ready(log_prob)

    # Plain-JAX reference (same math as the PyTorch module).
    c_ref = jnp.concatenate([desired_return, desired_horizon], axis=-1) * scaling_factor
    s_ref = jax.nn.sigmoid(state @ params["ws"] + params["bs"])
    ce_ref = jax.nn.sigmoid(c_ref @ params["wc"] + params["bc"])
    logits_ref = (s_ref * ce_ref) @ params["wf"] + params["bf"]
    ref = jax.nn.log_softmax(logits_ref, axis=1)

    assert log_prob.shape == (B, nA)
    assert jnp.allclose(log_prob, ref, atol=1e-5, rtol=1e-5)
    print("KERNEL_OK")
</pallas_src>

<mosaic_0001>
module attributes {stable_mosaic.version = 11 : i64} {
  func.func @_walkroom_kernel(%arg0: i32, %arg1: memref<8x19xf32, #tpu.memory_space<vmem>>, %arg2: memref<168x128xf32, #tpu.memory_space<vmem>>, %arg3: memref<8x128xf32, #tpu.memory_space<vmem>>) attributes {dimension_semantics = [#tpu.dimension_semantics<parallel>], iteration_bounds = array<i64: 1>, scalar_prefetch = 0 : i64, scratch_operands = 0 : i64, tpu.core_type = #tpu.core_type<tc>, window_params = [{transform_indices = @transform_0, window_bounds = array<i64: 8, 19>}, {pipeline_mode = #tpu.pipeline_mode<synchronous>, transform_indices = @transform_1, window_bounds = array<i64: 168, 128>}, {transform_indices = @transform_2, window_bounds = array<i64: 8, 128>}]} {
    %c0 = arith.constant 0 : index
    %c0_0 = arith.constant 0 : index
    %0 = vector.load %arg2[%c0, %c0_0] : memref<168x128xf32, #tpu.memory_space<vmem>>, vector<19x128xf32>
    %c24 = arith.constant 24 : index
    %c0_1 = arith.constant 0 : index
    %1 = vector.load %arg2[%c24, %c0_1] : memref<168x128xf32, #tpu.memory_space<vmem>>, vector<1x128xf32>
    %c32 = arith.constant 32 : index
    %c0_2 = arith.constant 0 : index
    %2 = vector.load %arg2[%c32, %c0_2] : memref<168x128xf32, #tpu.memory_space<vmem>>, vector<128x128xf32>
    %c160 = arith.constant 160 : index
    %c0_3 = arith.constant 0 : index
    %3 = vector.load %arg2[%c160, %c0_3] : memref<168x128xf32, #tpu.memory_space<vmem>>, vector<1x128xf32>
    %c0_4 = arith.constant 0 : index
    %c0_5 = arith.constant 0 : index
    %4 = vector.load %arg1[%c0_4, %c0_5] : memref<8x19xf32, #tpu.memory_space<vmem>>, vector<8x19xf32>
    %cst = arith.constant dense<0.000000e+00> : vector<8x128xf32>
    %5 = tpu.matmul %4, %0, %cst {dimension_numbers = #tpu.dot_dimension_numbers<[1], [0], [0], [1], [0, 0, 1, 1], [], []>} : vector<8x19xf32>, vector<19x128xf32>, vector<8x128xf32> -> vector<8x128xf32>
    %6 = vector.broadcast %1 : vector<1x128xf32> to vector<8x128xf32>
    %7 = arith.addf %5, %6 : vector<8x128xf32>
    %8 = arith.negf %7 : vector<8x128xf32>
    %9 = math.exp %8 : vector<8x128xf32>
    %cst_6 = arith.constant 1.000000e+00 : f32
    %10 = vector.broadcast %cst_6 : f32 to vector<8x128xf32>
    %11 = arith.addf %10, %9 : vector<8x128xf32>
    %12 = arith.divf %10, %11 : vector<8x128xf32>
    %c64_i32 = arith.constant 64 : i32
    %13 = tpu.dynamic_rotate %12 by %c64_i32 dim 1 : vector<8x128xf32>, i32 -> vector<8x128xf32>
    %14 = arith.mulf %12, %13 : vector<8x128xf32>
    %cst_7 = arith.constant dense<0.000000e+00> : vector<8x128xf32>
    %15 = tpu.matmul %14, %2, %cst_7 {dimension_numbers = #tpu.dot_dimension_numbers<[1], [0], [0], [1], [0, 0, 1, 1], [], []>} : vector<8x128xf32>, vector<128x128xf32>, vector<8x128xf32> -> vector<8x128xf32>
    %16 = vector.broadcast %3 : vector<1x128xf32> to vector<8x128xf32>
    %17 = arith.addf %15, %16 : vector<8x128xf32>
    %cst_8 = arith.constant dense<0xFF800000> : vector<8xf32>
    %18 = vector.multi_reduction <maximumf>, %17, %cst_8 [1] : vector<8x128xf32> to vector<8xf32>
    %19 = vector.shape_cast %18 : vector<8xf32> to vector<8x1xf32>
    %20 = vector.broadcast %19 : vector<8x1xf32> to vector<8x128xf32>
    %21 = arith.subf %17, %20 : vector<8x128xf32>
    %22 = math.exp %21 : vector<8x128xf32>
    %cst_9 = arith.constant dense<0.000000e+00> : vector<8xf32>
    %23 = vector.multi_reduction <add>, %22, %cst_9 [1] : vector<8x128xf32> to vector<8xf32>
    %24 = vector.shape_cast %23 : vector<8xf32> to vector<8x1xf32>
    %25 = math.log %24 : vector<8x1xf32>
    %26 = arith.addf %19, %25 : vector<8x1xf32>
    %27 = vector.broadcast %26 : vector<8x1xf32> to vector<8x128xf32>
    %28 = arith.subf %17, %27 : vector<8x128xf32>
    %c0_10 = arith.constant 0 : index
    %c0_11 = arith.constant 0 : index
    %29 = vector.load %arg3[%c0_10, %c0_11] : memref<8x128xf32, #tpu.memory_space<vmem>>, vector<8x128xf32>
    tpu.vector_store %arg3[%c0_10, %c0_11], %28 {strides = array<i32>} : memref<8x128xf32, #tpu.memory_space<vmem>>, vector<8x128xf32>,
    return
  }
  func.func @transform_0(%arg0: i32) -> (i32, i32) {
    %c0_i32 = arith.constant 0 : i32
    %c0_i32_0 = arith.constant 0 : i32
    return %arg0, %c0_i32 : i32, i32
  }
  func.func @transform_1(%arg0: i32) -> (i32, i32) {
    %c0_i32 = arith.constant 0 : i32
    %c0_i32_0 = arith.constant 0 : i32
    %c0_i32_1 = arith.constant 0 : i32
    return %c0_i32, %c0_i32_0 : i32, i32
  }
  func.func @transform_2(%arg0: i32) -> (i32, i32) {
    %c0_i32 = arith.constant 0 : i32
    %c0_i32_0 = arith.constant 0 : i32
    return %arg0, %c0_i32 : i32, i32
  }
}

</mosaic_0001>

<bundles_post_ra>
// kernel: walkroom_forward.1
= control target key start
LH: loop header
LB: loop body
LE: loop exit
PB: predicated region body
PF: predicated region fallthrough
CT: control target
= control target key end

     0   :  { %7 = vsyncpa [#allocation3], 0  ;;  %s365_s9 = smov [#allocation2]   ;;  %s405_s0 = inlined_call_operand.vmem [shape: f32[8,19], index: 0, kind: input, shape index: {}]   ;;  %s406_s1 = inlined_call_operand.hbm [shape: f32[168,128], index: 1, kind: input, shape index: {}]   ;;  %s407_s2 = inlined_call_operand.vmem [shape: f32[8,128], index: 2, kind: output, shape index: {}]  }
   0x1   :  { %s15_s10 = sshll.u32 %s365_s9, 4  ;;  %s341_s13 = scalar_lea.hbm %s406_s1, 2688  ;;  %s16_s10 = int_to_ptr.vmem [resolvable:$true] %s15_s10 }
   0x2   :  { %p342_p0 = scmp.ne.s32.totalorder %s406_s1, %s341_s13  ;;  %p345_p1 = scmp.lt.u32.totalorder %s341_s13, %s406_s1 }
   0x4   :  { %p347_p2 = pnand %p345_p1, %p342_p0 }
   0x6   :  { %350 = shalt.err (!%p347_p2)
}
   0x7   :  { %s351_s18 = scalar_lea.vmem %s16_s10, 2688  ;;  %p356_p4 = scmp.lt.s32.totalorder %s16_s10, %s16_s10 }
   0x8   :  { %p352_p3 = scmp.ne.s32.totalorder %s16_s10, %s351_s18  ;;  %p357_p5 = scmp.lt.s32.totalorder %s351_s18, %s351_s18 }
   0xa   :  { %p358_p6 = por %p357_p5, %p356_p4 }
   0xc   :  { %p359_p7 = pnand %p358_p6, %p352_p3 }
   0xe   :  { %362 = shalt.err (!%p359_p7)
}
   0xf   :  { %s366_s19 = smov 128   ;;  %s367_s20 = smov 8  }
  0x10   :  { %21 = dma.hbm_to_vmem [thread:$0]  %s406_s1, 2688, %s16_s10, [#allocation3], %s366_s19, %s366_s19, %s367_s20  }
  0x11   :  { %363 = dma.done.wait [#allocation3], 2688  }
  0x12   :  { %364 = vsyncadd [#allocation3], 4294964608  ;;  %v368_v0 = vmov 0.0|0.0   ;;  %vm369_vm0 = vmmov 0   ;;  %v370_v1 = vmov 0.0   ;;  %v25_v2 = vld [vmem:[#allocation2] sm:$0xff] }
  0x13   :  { %299 = vmatprep.subr.bf16.mxu0 %v368_v0  ;;  %261 = vmatprep.mubr.msk.f32.mxu0 %vm369_vm0, %v370_v1  ;;  %v26_v3 = vld [vmem:[#allocation2 + $0x8] sm:$0xff]  ;;  %v27_v5 = vld [vmem:[#allocation2 + $0x10] sm:$0x7]  ;;  %vm55_vm1 = vcmask 1042432   ;;  %v46_v6 = vld [vmem:[%s405_s0] sm:$0xff]  ;;  %vm51_vm2 = vcmask 154624  }
  0x14   :  { %302 = vmatprep.subr.bf16.mxu1 %v368_v0  ;;  %296 = vmatprep.mubr.msk.f32.mxu1 %vm369_vm0, %v370_v1  ;;  %v300_v4 = vpack.c.bf16 %v26_v3, %v25_v2  ;;  %v29_v7 = vld [vmem:[#allocation2 + $0x20] sm:$0xff]  ;;  %v30_v8 = vld [vmem:[#allocation2 + $0x28] sm:$0xff]  ;;  %v31_v9 = vld [vmem:[#allocation2 + $0x30] sm:$0xff]  ;;  %s371_s0 = smov 64  }
  0x15   :  { %v303_v10 = vpack.c.bf16 %v30_v8, %v29_v7  ;;  %v32_v11 = vld [vmem:[#allocation2 + $0x38] sm:$0xff]  ;;  %v33_v13 = vld [vmem:[#allocation2 + $0x40] sm:$0xff]  ;;  %v34_v14 = vld [vmem:[#allocation2 + $0x48] sm:$0xff] }
  0x16   :  { %301 = vmatpush3.bf16.msra.mxu0 %v300_v4  ;;  %v306_v12 = vpack.c.bf16 %v32_v11, %v31_v9  ;;  %v309_v15 = vpack.c.bf16 %v34_v14, %v33_v13  ;;  %v35_v16 = vld [vmem:[#allocation2 + $0x50] sm:$0xff]  ;;  %v36_v17 = vld [vmem:[#allocation2 + $0x58] sm:$0xff]  ;;  %v37_v19 = vld [vmem:[#allocation2 + $0x60] sm:$0xff] }
  0x17   :  { %259 = vmatprep.subr.mxu0 %v370_v1  ;;  %304 = vmatpush3.bf16.msra.mxu1 %v303_v10  ;;  %v312_v18 = vpack.c.bf16 %v36_v17, %v35_v16  ;;  %v38_v20 = vld [vmem:[#allocation2 + $0x68] sm:$0xff]  ;;  %v39_v22 = vld [vmem:[#allocation2 + $0x70] sm:$0xff]  ;;  %v40_v23 = vld [vmem:[#allocation2 + $0x78] sm:$0xff] }
  0x18   :  { %305 = vmatprep.subr.bf16.mxu1 %v368_v0  ;;  %v315_v21 = vpack.c.bf16 %v38_v20, %v37_v19  ;;  %v318_v24 = vpack.c.bf16 %v40_v23, %v39_v22  ;;  %v41_v25 = vld [vmem:[#allocation2 + $0x80] sm:$0xff]  ;;  %v42_v26 = vld [vmem:[#allocation2 + $0x88] sm:$0xff]  ;;  %v43_v28 = vld [vmem:[#allocation2 + $0x90] sm:$0xff] }
  0x19   :  { %v321_v27 = vpack.c.bf16 %v42_v26, %v41_v25  ;;  %v44_v29 = vld [vmem:[#allocation2 + $0x98] sm:$0xff]  ;;  %v233_v41 = vld [vmem:[#allocation2 + $0xa0] ss:$0 sm:$0xff] }
  0x1a   :  { %260 = vmatpush3.msk.msra.mxu0 %vm55_vm1, %v27_v5  ;;  %v324_v30 = vpack.c.bf16 %v44_v29, %v43_v28  ;;  %v229_v31 = vld [vmem:[#allocation2 + $0x18] ss:$0 sm:$0xff] }
  0x1b   :  { %262 = vmatmul.mubr.msk.f32.vlgmr.msra.gmra.mrb[0].mxu0 %vm51_vm2, %v46_v6  ;;  %307 = vmatpush3.bf16.msra.mxu1 %v306_v12 }
  0x1c   :  { %308 = vmatprep.subr.bf16.mxu1 %v368_v0 }
  0x1f   :  { %310 = vmatpush3.bf16.msra.mxu1 %v309_v15 }
  0x20   :  { %311 = vmatprep.subr.bf16.mxu1 %v368_v0 }
  0x23   :  { %313 = vmatpush3.bf16.msra.mxu1 %v312_v18 }
  0x24   :  { %314 = vmatprep.subr.bf16.mxu1 %v368_v0 }
  0x27   :  { %316 = vmatpush3.bf16.msra.mxu1 %v315_v21 }
  0x28   :  { %317 = vmatprep.subr.bf16.mxu1 %v368_v0 }
  0x2b   :  { %319 = vmatpush3.bf16.msra.mxu1 %v318_v24 }
  0x2c   :  { %320 = vmatprep.subr.bf16.mxu1 %v368_v0 }
  0x2f   :  { %322 = vmatpush3.bf16.msra.mxu1 %v321_v27 }
  0x30   :  { %323 = vmatprep.subr.bf16.mxu1 %v368_v0 }
  0x33   :  { %325 = vmatpush3.bf16.msra.mxu1 %v324_v30 }
  0xee   :  { %v125_v32 = vpop.f32.mrb[0].mxu0 }
  0xef   :  { %v126_v33 = vadd.f32 %v229_v31, %v125_v32  ;;  %v263_v34 = vpop.f32.mrb[1].mxu0 }
  0xf1   :  { %v232_v35 = vmul.f32 -1.442695, %v126_v33 }
  0xf3   :  { %333 = vpow2.f32 %v232_v35 }
  0xfd   :  { %v334_v36 = vpop.eup %333 }
  0xfe   :  { %v132_v37 = vadd.f32 1.0, %v334_v36 }
 0x100   :  { %335 = vrcp.f32 %v132_v37 }
 0x10a   :  { %v336_v38 = vpop.eup %335 }
 0x10b   :  { %135 = vrot.lane.b32.xlu0 %v336_v38, %s371_s0 }
 0x17d   :  { %v136_v39 = vpop.permute.xlu0 %135 }
 0x17e   :  { %v137_v40 = vmul.f32 %v336_v38, %v136_v39 }
 0x180   :  { %297 = vmatmul.mubr.f32.vlgmr.msra.gmra.mrb[0].mxu1 %v137_v40 }
 0x253   :  { %v208_v42 = vpop.f32.mrb[0].mxu1 }
 0x254   :  { %v209_v43 = vadd.f32 %v233_v41, %v208_v42  ;;  %v298_v44 = vpop.f32.mrb[1].mxu1 }
 0x256   :  { %212 = vmax.xlane.f32.xlu0 %v209_v43 }
 0x2e3   :  { %v213_v45 = vpop.xlane.xlu0 %212 }
 0x2e4   :  { %v214_v46 = vsub.f32 %v209_v43, %v213_v45 }
 0x2e6   :  { %v215_v47 = vmul.f32 1.442695, %v214_v46 }
 0x2e8   :  { %337 = vpow2.f32 %v215_v47 }
 0x2f2   :  { %v338_v48 = vpop.eup %337 }
 0x2f3   :  { %217 = vadd.xlane.f32.xlu1 %v338_v48 }
 0x380   :  { %v218_v49 = vpop.xlane.xlu1 %217 }
 0x381   :  { %339 = vlog2.f32 %v218_v49 }
 0x38b   :  { %v340_v50 = vpop.eup %339 }
 0x38c   :  { %v220_v51 = vmul.f32 0.6931472, %v340_v50 }
 0x38e   :  { %v221_v52 = vadd.f32 %v220_v51, %v213_v45 }
 0x390   :  { %v222_v53 = vsub.f32 %v209_v43, %v221_v52 }
 0x392   :  { %223 = vst [vmem:[%s407_s2] sm:$0xff] %v222_v53 }
 0x393   :  { %228 = vsyncpa [#allocation3], 1 }

</bundles_post_ra>
